<compile_context>
chip_gen: v7x
topology: tpu7x:2x2x1
jax: 0.10.0
libtpu: 0.0.40
codegen_flags: <defaults>
</compile_context>

<pallas_src>
import numpy as np
import jax
import jax.numpy as jnp
from jax.experimental import pallas as pl
from jax.experimental.pallas import tpu as pltpu


def _round_up(v, m):
    return ((v + m - 1) // m) * m


# ----------------------------------------------------------------------------
# Kernel
# ----------------------------------------------------------------------------
def meta2_kernel(ef_ref, col_ref, x_ref, invc_ref,
                 wA_ref, wB_ref, wC_ref, wD_ref, wE_ref,
                 out_ref, agg_ref):
    f32 = jnp.float32
    ke = pl.program_id(0)

    @pl.when(ke == 0)
    def _init():
        agg_ref[...] = jnp.zeros_like(agg_ref)

    ef = ef_ref[...]                           # (3, TE)  rows: x[row], x[col], edge_attr
    wA = wA_ref[...]                           # (10, 4)
    wB = wB_ref[...]                           # (10, 12)
    wC = wC_ref[...]                           # (10, 11)

    # EdgeModel layer 1 (u=1 folded into bias), transposed layout (feat, edges)
    he = jnp.maximum(
        jnp.dot(wA[:, 0:3], ef, preferred_element_type=f32) + wA[:, 3:4], 0.0)   # (10, TE)

    # folded: EdgeModel Lin(10,19) composed with NodeModel mlp1 edge block
    h1 = jnp.maximum(
        wB[:, 0:1] * ef[0:1, :]
        + jnp.dot(wB[:, 1:11], he, preferred_element_type=f32)
        + wB[:, 11:12], 0.0)                                                      # (10, TE)

    # folded: NodeModel mlp1 Lin(10,19) composed with mlp2 agg block -> 10 wide
    msg = jnp.dot(wC[:, 0:10], h1, preferred_element_type=f32) + wC[:, 10:11]     # (10, TE)

    # segment-sum: one-hot built on the fly from col ids (no dense HBM matrix)
    npad = agg_ref.shape[1]
    te = ef.shape[1]
    node_ids = jax.lax.broadcasted_iota(jnp.int32, (npad, te), 0)
    onehot = (node_ids == col_ref[...]).astype(f32)                               # (Npad, TE)
    agg_ref[...] += jax.lax.dot_general(
        msg, onehot, (((1,), (1,)), ((), ())), preferred_element_type=f32)        # (10, Npad)

    @pl.when(ke == pl.num_programs(0) - 1)
    def _finalize():
        wD = wD_ref[...]                       # (10, 13)
        wE = wE_ref[...]                       # (1, 11)
        x_t = x_ref[...]                       # (1, Npad)
        agg_mean = agg_ref[...] * invc_ref[...]                                   # (10, Npad)

        # NodeModel mlp2 layer 1 (u=1 and the folded agg-block bias in wD[:,1])
        h2 = jnp.maximum(wD[:, 0:1] * x_t + agg_mean + wD[:, 1:2], 0.0)           # (10, Npad)
        # folded: mlp2 Lin(10,19) -> fc1 -> BN(eval)   then ReLU
        h3 = jnp.maximum(
            jnp.dot(wD[:, 2:12], h2, preferred_element_type=f32) + wD[:, 12:13],
            0.0)                                                                  # (10, Npad)
        # fc2: lane-dense (1, Npad) output slab
        out_ref[...] = (jnp.dot(wE[:, 0:10], h3, preferred_element_type=f32)
                        + wE[:, 10:11])


# ----------------------------------------------------------------------------
# Parameter init (PyTorch-style) and offline folding
# ----------------------------------------------------------------------------
def init_params(key):
    def linear(k, fan_in, fan_out):
        k1, k2 = jax.random.split(k)
        bound = 1.0 / np.sqrt(fan_in)
        w = jax.random.uniform(k1, (fan_in, fan_out), jnp.float32, -bound, bound)
        b = jax.random.uniform(k2, (1, fan_out), jnp.float32, -bound, bound)
        return w, b

    keys = jax.random.split(key, 8)
    p = {}
    p['ew1'], p['eb1'] = linear(keys[0], 4, 10)     # EdgeModel Lin(4, 10)
    p['ew2'], p['eb2'] = linear(keys[1], 10, 19)    # EdgeModel Lin(10, 19)
    p['n1w1'], p['n1b1'] = linear(keys[2], 20, 10)  # NodeModel mlp1 Lin(20, 10)
    p['n1w2'], p['n1b2'] = linear(keys[3], 10, 19)  # NodeModel mlp1 Lin(10, 19)
    p['n2w1'], p['n2b1'] = linear(keys[4], 21, 10)  # NodeModel mlp2 Lin(21, 10)
    p['n2w2'], p['n2b2'] = linear(keys[5], 10, 19)  # NodeModel mlp2 Lin(10, 19)
    p['fc1w'], p['fc1b'] = linear(keys[6], 19, 10)  # META2 fc1
    p['fc2w'], p['fc2b'] = linear(keys[7], 10, 1)   # META2 fc2

    # BatchNorm1d(10), fresh init, eval mode -> scale/shift
    eps = 1e-5
    gamma = jnp.ones((1, 10), jnp.float32)
    beta = jnp.zeros((1, 10), jnp.float32)
    rmean = jnp.zeros((1, 10), jnp.float32)
    rvar = jnp.ones((1, 10), jnp.float32)
    scale = gamma / jnp.sqrt(rvar + eps)
    p['bns'] = scale
    p['bnb'] = beta - rmean * scale
    # dense2_bn (BatchNorm1d(1)) exists in __init__ but is unused in forward.
    return p


def fold_params(p):
    """Fold u=1, the three linear-linear pairs and eval-mode BN into 5 slabs."""
    u = 1.0
    # Edge layer 1 (transposed) + bias with u folded in.
    wA = jnp.concatenate([p['ew1'][0:3].T,
                          (p['eb1'] + u * p['ew1'][3:4]).T], axis=1)          # (10, 4)
    # EdgeModel Lin(10,19) @ NodeModel-mlp1 edge block (rows 1..19 of n1w1).
    Wf1 = p['ew2'] @ p['n1w1'][1:20]                                          # (10, 10)
    bf1 = p['eb2'] @ p['n1w1'][1:20] + p['n1b1']                              # (1, 10)
    wB = jnp.concatenate([p['n1w1'][0:1].T, Wf1.T, bf1.T], axis=1)            # (10, 12)
    # NodeModel-mlp1 Lin(10,19) @ mlp2 agg block (rows 1..19 of n2w1).
    Wf2 = p['n1w2'] @ p['n2w1'][1:20]                                         # (10, 10)
    bf2 = p['n1b2'] @ p['n2w1'][1:20]                                         # (1, 10)
    wC = jnp.concatenate([Wf2.T, bf2.T], axis=1)                              # (10, 11)
    # mlp2 Lin(10,19) @ fc1 with BN(eval) scale/shift folded.
    Wh = (p['n2w2'] @ p['fc1w']) * p['bns']                                   # (10, 10)
    bh = (p['n2b2'] @ p['fc1w'] + p['fc1b']) * p['bns'] + p['bnb']            # (1, 10)
    bn2 = p['n2b1'] + u * p['n2w1'][20:21]                                    # (1, 10)
    wD = jnp.concatenate([p['n2w1'][0:1].T, bn2.T, Wh.T, bh.T], axis=1)       # (10, 13)
    wE = jnp.concatenate([p['fc2w'].T, p['fc2b']], axis=1)                    # (1, 11)
    return wA, wB, wC, wD, wE


# ----------------------------------------------------------------------------
# Wrapper
# ----------------------------------------------------------------------------
def meta2_forward(x, edge_index, edge_attr, params):
    x = x.astype(jnp.float32)
    edge_attr = edge_attr.astype(jnp.float32)
    N = x.shape[0]
    E = edge_attr.shape[0]
    row = edge_index[0]
    col = edge_index[1]

    N_pad = _round_up(max(N, 1), 128)
    TE = int(min(512, _round_up(max(E, 1), 128)))      # edge tile (multiple of 128)
    E_pad = _round_up(max(E, 1), TE)
    n_tiles = E_pad // TE

    # Transposed (feature-on-sublane, rows-on-lane) data layout, zero-padded.
    xt = jnp.zeros((1, N_pad), jnp.float32).at[0, :N].set(x[:, 0])
    ef = jnp.zeros((3, E_pad), jnp.float32)
    ef = ef.at[0, :E].set(x[row, 0])                    # x[row]
    ef = ef.at[1, :E].set(x[col, 0])                    # x[col]
    ef = ef.at[2, :E].set(edge_attr[:, 0])              # edge_attr
    col_pad = jnp.full((1, E_pad), -1, jnp.int32).at[0, :E].set(col.astype(jnp.int32))
    counts = jnp.zeros((N_pad,), jnp.float32).at[col].add(1.0)
    invc = (1.0 / jnp.maximum(counts, 1.0)).reshape(1, N_pad)

    wA, wB, wC, wD, wE = fold_params(params)

    out_t = pl.pallas_call(
        meta2_kernel,
        out_shape=jax.ShapeDtypeStruct((1, N_pad), jnp.float32),
        grid=(n_tiles,),
        in_specs=[
            pl.BlockSpec((3, TE), lambda k: (0, k)),        # edge features (tiled)
            pl.BlockSpec((1, TE), lambda k: (0, k)),        # col ids (tiled)
            pl.BlockSpec((1, N_pad), lambda k: (0, 0)),     # x (resident)
            pl.BlockSpec((1, N_pad), lambda k: (0, 0)),     # 1/count (resident)
            pl.BlockSpec((10, 4), lambda k: (0, 0)),        # wA
            pl.BlockSpec((10, 12), lambda k: (0, 0)),       # wB
            pl.BlockSpec((10, 11), lambda k: (0, 0)),       # wC
            pl.BlockSpec((10, 13), lambda k: (0, 0)),       # wD
            pl.BlockSpec((1, 11), lambda k: (0, 0)),        # wE
        ],
        out_specs=pl.BlockSpec((1, N_pad), lambda k: (0, 0)),
        scratch_shapes=[pltpu.VMEM((10, N_pad), jnp.float32)],
        compiler_params=pltpu.CompilerParams(
            dimension_semantics=("arbitrary",)),
    )(ef, col_pad, xt, invc, wA, wB, wC, wD, wE)

    return out_t[:, :N].T                               # (N, 1), matches PyTorch


# ----------------------------------------------------------------------------
# Pure-JAX reference (un-folded), matching the PyTorch forward in eval mode
# ----------------------------------------------------------------------------
def meta2_reference(x, edge_index, edge_attr, params):
    p = params
    x = x.astype(jnp.float32)
    edge_attr = edge_attr.astype(jnp.float32)
    N = x.shape[0]
    row, col = edge_index[0], edge_index[1]
    u = jnp.ones((1, 1), jnp.float32)
    batch = jnp.zeros((N,), jnp.int32)

    # EdgeModel
    e_in = jnp.concatenate([x[row], x[col], edge_attr, u[batch[row]]], axis=1)
    h = jnp.maximum(e_in @ p['ew1'] + p['eb1'], 0.0)
    ea2 = h @ p['ew2'] + p['eb2']
    # NodeModel
    n_in = jnp.concatenate([x[row], ea2], axis=1)
    h = jnp.maximum(n_in @ p['n1w1'] + p['n1b1'], 0.0)
    msg = h @ p['n1w2'] + p['n1b2']
    summed = jnp.zeros((N, msg.shape[1]), jnp.float32).at[col].add(msg)
    counts = jnp.zeros((N,), jnp.float32).at[col].add(1.0)
    agg = summed / jnp.maximum(counts, 1.0)[:, None]
    n2_in = jnp.concatenate([x, agg, u[batch]], axis=1)
    h = jnp.maximum(n2_in @ p['n2w1'] + p['n2b1'], 0.0)
    x2 = h @ p['n2w2'] + p['n2b2']
    # head
    h = x2 @ p['fc1w'] + p['fc1b']
    h = jnp.maximum(h * p['bns'] + p['bnb'], 0.0)
    return h @ p['fc2w'] + p['fc2b']


if __name__ == "__main__":
    key = jax.random.PRNGKey(0)
    kp, kx, ke = jax.random.split(key, 3)
    params = init_params(kp)

    # small graph consistent with META2 defaults (num_edges=6, 1-d node/edge feats)
    N, E = 5, 6
    x = jax.random.normal(kx, (N, 1), jnp.float32)
    edge_attr = jax.random.normal(ke, (E, 1), jnp.float32)
    edge_index = jnp.array([[0, 1, 2, 3, 4, 0],
                            [1, 2, 3, 4, 0, 2]], dtype=jnp.int32)

    out = meta2_forward(x, edge_index, edge_attr, params)
    out = jax.block_until_ready(out)

    ref = meta2_reference(x, edge_index, edge_attr, params)
    assert out.shape == (N, 1)
    np.testing.assert_allclose(np.asarray(out), np.asarray(ref),
                               rtol=1e-3, atol=1e-3)
    print("KERNEL_OK")
</pallas_src>

<mosaic_0001>
module attributes {stable_mosaic.version = 11 : i64} {
  func.func @meta2_kernel(%arg0: i32, %arg1: memref<3x128xf32, #tpu.memory_space<vmem>>, %arg2: memref<1x128xi32, #tpu.memory_space<vmem>>, %arg3: memref<1x128xf32, #tpu.memory_space<vmem>>, %arg4: memref<1x128xf32, #tpu.memory_space<vmem>>, %arg5: memref<10x4xf32, #tpu.memory_space<vmem>>, %arg6: memref<10x12xf32, #tpu.memory_space<vmem>>, %arg7: memref<10x11xf32, #tpu.memory_space<vmem>>, %arg8: memref<10x13xf32, #tpu.memory_space<vmem>>, %arg9: memref<1x11xf32, #tpu.memory_space<vmem>>, %arg10: memref<1x128xf32, #tpu.memory_space<vmem>>, %arg11: memref<10x128xf32, #tpu.memory_space<vmem>>) attributes {dimension_semantics = [#tpu.dimension_semantics<arbitrary>], iteration_bounds = array<i64: 1>, scalar_prefetch = 0 : i64, scratch_operands = 1 : i64, tpu.core_type = #tpu.core_type<tc>, window_params = [{transform_indices = @transform_0, window_bounds = array<i64: 3, 128>}, {transform_indices = @transform_1, window_bounds = array<i64: 1, 128>}, {pipeline_mode = #tpu.pipeline_mode<synchronous>, transform_indices = @transform_2, window_bounds = array<i64: 1, 128>}, {pipeline_mode = #tpu.pipeline_mode<synchronous>, transform_indices = @transform_3, window_bounds = array<i64: 1, 128>}, {pipeline_mode = #tpu.pipeline_mode<synchronous>, transform_indices = @transform_4, window_bounds = array<i64: 10, 4>}, {pipeline_mode = #tpu.pipeline_mode<synchronous>, transform_indices = @transform_5, window_bounds = array<i64: 10, 12>}, {pipeline_mode = #tpu.pipeline_mode<synchronous>, transform_indices = @transform_6, window_bounds = array<i64: 10, 11>}, {pipeline_mode = #tpu.pipeline_mode<synchronous>, transform_indices = @transform_7, window_bounds = array<i64: 10, 13>}, {pipeline_mode = #tpu.pipeline_mode<synchronous>, transform_indices = @transform_8, window_bounds = array<i64: 1, 11>}, {pipeline_mode = #tpu.pipeline_mode<synchronous>, transform_indices = @transform_9, window_bounds = array<i64: 1, 128>}]} {
    %c0_i32 = arith.constant 0 : i32
    %0 = arith.cmpi eq, %arg0, %c0_i32 : i32
    %1 = arith.extui %0 : i1 to i32
    %c0_i32_0 = arith.constant 0 : i32
    %2 = arith.cmpi ne, %1, %c0_i32_0 : i32
    scf.if %2 {
      %cst_21 = arith.constant 0.000000e+00 : f32
      %45 = vector.broadcast %cst_21 : f32 to vector<10x128xf32>
      %c0_22 = arith.constant 0 : index
      %c0_23 = arith.constant 0 : index
      %46 = vector.load %arg11[%c0_22, %c0_23] : memref<10x128xf32, #tpu.memory_space<vmem>>, vector<10x128xf32>
      tpu.vector_store %arg11[%c0_22, %c0_23], %45 {strides = array<i32>} : memref<10x128xf32, #tpu.memory_space<vmem>>, vector<10x128xf32>,
    } else {
    }
    %c0 = arith.constant 0 : index
    %c0_1 = arith.constant 0 : index
    %3 = vector.load %arg1[%c0, %c0_1] : memref<3x128xf32, #tpu.memory_space<vmem>>, vector<3x128xf32>
    %c0_2 = arith.constant 0 : index
    %c0_3 = arith.constant 0 : index
    %4 = vector.load %arg5[%c0_2, %c0_3] : memref<10x4xf32, #tpu.memory_space<vmem>>, vector<10x4xf32>
    %c0_4 = arith.constant 0 : index
    %c0_5 = arith.constant 0 : index
    %5 = vector.load %arg6[%c0_4, %c0_5] : memref<10x12xf32, #tpu.memory_space<vmem>>, vector<10x12xf32>
    %c0_6 = arith.constant 0 : index
    %c0_7 = arith.constant 0 : index
    %6 = vector.load %arg7[%c0_6, %c0_7] : memref<10x11xf32, #tpu.memory_space<vmem>>, vector<10x11xf32>
    %7 = vector.extract_strided_slice %4 {offsets = [0, 0], sizes = [10, 3], strides = [1, 1]} : vector<10x4xf32> to vector<10x3xf32>
    %cst = arith.constant dense<0.000000e+00> : vector<10x128xf32>
    %8 = tpu.matmul %7, %3, %cst {dimension_numbers = #tpu.dot_dimension_numbers<[1], [0], [0], [1], [0, 0, 1, 1], [], []>} : vector<10x3xf32>, vector<3x128xf32>, vector<10x128xf32> -> vector<10x128xf32>
    %9 = vector.extract_strided_slice %4 {offsets = [0, 3], sizes = [10, 1], strides = [1, 1]} : vector<10x4xf32> to vector<10x1xf32>
    %10 = vector.broadcast %9 : vector<10x1xf32> to vector<10x128xf32>
    %11 = arith.addf %8, %10 : vector<10x128xf32>
    %cst_8 = arith.constant 0.000000e+00 : f32
    %12 = vector.broadcast %cst_8 : f32 to vector<10x128xf32>
    %13 = arith.maximumf %11, %12 : vector<10x128xf32>
    %14 = vector.extract_strided_slice %5 {offsets = [0, 0], sizes = [10, 1], strides = [1, 1]} : vector<10x12xf32> to vector<10x1xf32>
    %15 = vector.extract_strided_slice %3 {offsets = [0, 0], sizes = [1, 128], strides = [1, 1]} : vector<3x128xf32> to vector<1x128xf32>
    %16 = vector.broadcast %14 : vector<10x1xf32> to vector<10x128xf32>
    %17 = vector.broadcast %15 : vector<1x128xf32> to vector<10x128xf32>
    %18 = arith.mulf %16, %17 : vector<10x128xf32>
    %19 = vector.extract_strided_slice %5 {offsets = [0, 1], sizes = [10, 10], strides = [1, 1]} : vector<10x12xf32> to vector<10x10xf32>
    %cst_9 = arith.constant dense<0.000000e+00> : vector<10x128xf32>
    %20 = tpu.matmul %19, %13, %cst_9 {dimension_numbers = #tpu.dot_dimension_numbers<[1], [0], [0], [1], [0, 0, 1, 1], [], []>} : vector<10x10xf32>, vector<10x128xf32>, vector<10x128xf32> -> vector<10x128xf32>
    %21 = arith.addf %18, %20 : vector<10x128xf32>
    %22 = vector.extract_strided_slice %5 {offsets = [0, 11], sizes = [10, 1], strides = [1, 1]} : vector<10x12xf32> to vector<10x1xf32>
    %23 = vector.broadcast %22 : vector<10x1xf32> to vector<10x128xf32>
    %24 = arith.addf %21, %23 : vector<10x128xf32>
    %cst_10 = arith.constant 0.000000e+00 : f32
    %25 = vector.broadcast %cst_10 : f32 to vector<10x128xf32>
    %26 = arith.maximumf %24, %25 : vector<10x128xf32>
    %27 = vector.extract_strided_slice %6 {offsets = [0, 0], sizes = [10, 10], strides = [1, 1]} : vector<10x11xf32> to vector<10x10xf32>
    %cst_11 = arith.constant dense<0.000000e+00> : vector<10x128xf32>
    %28 = tpu.matmul %27, %26, %cst_11 {dimension_numbers = #tpu.dot_dimension_numbers<[1], [0], [0], [1], [0, 0, 1, 1], [], []>} : vector<10x10xf32>, vector<10x128xf32>, vector<10x128xf32> -> vector<10x128xf32>
    %29 = vector.extract_strided_slice %6 {offsets = [0, 10], sizes = [10, 1], strides = [1, 1]} : vector<10x11xf32> to vector<10x1xf32>
    %30 = vector.broadcast %29 : vector<10x1xf32> to vector<10x128xf32>
    %31 = arith.addf %28, %30 : vector<10x128xf32>
    %32 = tpu.iota {dimensions = array<i32: 0>} : vector<128x128xi32>
    %c0_12 = arith.constant 0 : index
    %c0_13 = arith.constant 0 : index
    %33 = vector.load %arg2[%c0_12, %c0_13] : memref<1x128xi32, #tpu.memory_space<vmem>>, vector<1x128xi32>
    %34 = vector.broadcast %33 : vector<1x128xi32> to vector<128x128xi32>
    %35 = arith.cmpi eq, %32, %34 : vector<128x128xi32>
    %36 = arith.extui %35 : vector<128x128xi1> to vector<128x128xi32>
    %37 = arith.sitofp %36 : vector<128x128xi32> to vector<128x128xf32>
    %c0_14 = arith.constant 0 : index
    %c0_15 = arith.constant 0 : index
    %38 = vector.load %arg11[%c0_14, %c0_15] : memref<10x128xf32, #tpu.memory_space<vmem>>, vector<10x128xf32>
    %cst_16 = arith.constant dense<0.000000e+00> : vector<10x128xf32>
    %39 = tpu.matmul %31, %37, %cst_16 {dimension_numbers = #tpu.dot_dimension_numbers<[1], [1], [0], [0], [0, 0, 1, 0], [], []>} : vector<10x128xf32>, vector<128x128xf32>, vector<10x128xf32> -> vector<10x128xf32>
    %40 = arith.addf %38, %39 : vector<10x128xf32>
    %c0_17 = arith.constant 0 : index
    %c0_18 = arith.constant 0 : index
    %41 = vector.load %arg11[%c0_17, %c0_18] : memref<10x128xf32, #tpu.memory_space<vmem>>, vector<10x128xf32>
    tpu.vector_store %arg11[%c0_17, %c0_18], %40 {strides = array<i32>} : memref<10x128xf32, #tpu.memory_space<vmem>>, vector<10x128xf32>,
    %c0_i32_19 = arith.constant 0 : i32
    %42 = arith.cmpi eq, %arg0, %c0_i32_19 : i32
    %43 = arith.extui %42 : i1 to i32
    %c0_i32_20 = arith.constant 0 : i32
    %44 = arith.cmpi ne, %43, %c0_i32_20 : i32
    scf.if %44 {
      %c0_21 = arith.constant 0 : index
      %c0_22 = arith.constant 0 : index
      %45 = vector.load %arg8[%c0_21, %c0_22] : memref<10x13xf32, #tpu.memory_space<vmem>>, vector<10x13xf32>
      %c0_23 = arith.constant 0 : index
      %c0_24 = arith.constant 0 : index
      %46 = vector.load %arg9[%c0_23, %c0_24] : memref<1x11xf32, #tpu.memory_space<vmem>>, vector<1x11xf32>
      %c0_25 = arith.constant 0 : index
      %c0_26 = arith.constant 0 : index
      %47 = vector.load %arg3[%c0_25, %c0_26] : memref<1x128xf32, #tpu.memory_space<vmem>>, vector<1x128xf32>
      %c0_27 = arith.constant 0 : index
      %c0_28 = arith.constant 0 : index
      %48 = vector.load %arg11[%c0_27, %c0_28] : memref<10x128xf32, #tpu.memory_space<vmem>>, vector<10x128xf32>
      %c0_29 = arith.constant 0 : index
      %c0_30 = arith.constant 0 : index
      %49 = vector.load %arg4[%c0_29, %c0_30] : memref<1x128xf32, #tpu.memory_space<vmem>>, vector<1x128xf32>
      %50 = vector.broadcast %49 : vector<1x128xf32> to vector<10x128xf32>
      %51 = arith.mulf %48, %50 : vector<10x128xf32>
      %52 = vector.extract_strided_slice %45 {offsets = [0, 0], sizes = [10, 1], strides = [1, 1]} : vector<10x13xf32> to vector<10x1xf32>
      %53 = vector.broadcast %52 : vector<10x1xf32> to vector<10x128xf32>
      %54 = vector.broadcast %47 : vector<1x128xf32> to vector<10x128xf32>
      %55 = arith.mulf %53, %54 : vector<10x128xf32>
      %56 = arith.addf %55, %51 : vector<10x128xf32>
      %57 = vector.extract_strided_slice %45 {offsets = [0, 1], sizes = [10, 1], strides = [1, 1]} : vector<10x13xf32> to vector<10x1xf32>
      %58 = vector.broadcast %57 : vector<10x1xf32> to vector<10x128xf32>
      %59 = arith.addf %56, %58 : vector<10x128xf32>
      %cst_31 = arith.constant 0.000000e+00 : f32
      %60 = vector.broadcast %cst_31 : f32 to vector<10x128xf32>
      %61 = arith.maximumf %59, %60 : vector<10x128xf32>
      %62 = vector.extract_strided_slice %45 {offsets = [0, 2], sizes = [10, 10], strides = [1, 1]} : vector<10x13xf32> to vector<10x10xf32>
      %cst_32 = arith.constant dense<0.000000e+00> : vector<10x128xf32>
      %63 = tpu.matmul %62, %61, %cst_32 {dimension_numbers = #tpu.dot_dimension_numbers<[1], [0], [0], [1], [0, 0, 1, 1], [], []>} : vector<10x10xf32>, vector<10x128xf32>, vector<10x128xf32> -> vector<10x128xf32>
      %64 = vector.extract_strided_slice %45 {offsets = [0, 12], sizes = [10, 1], strides = [1, 1]} : vector<10x13xf32> to vector<10x1xf32>
      %65 = vector.broadcast %64 : vector<10x1xf32> to vector<10x128xf32>
      %66 = arith.addf %63, %65 : vector<10x128xf32>
      %cst_33 = arith.constant 0.000000e+00 : f32
      %67 = vector.broadcast %cst_33 : f32 to vector<10x128xf32>
      %68 = arith.maximumf %66, %67 : vector<10x128xf32>
      %69 = vector.extract_strided_slice %46 {offsets = [0, 0], sizes = [1, 10], strides = [1, 1]} : vector<1x11xf32> to vector<1x10xf32>
      %cst_34 = arith.constant dense<0.000000e+00> : vector<1x128xf32>
      %70 = tpu.matmul %69, %68, %cst_34 {dimension_numbers = #tpu.dot_dimension_numbers<[1], [0], [0], [1], [0, 0, 1, 1], [], []>} : vector<1x10xf32>, vector<10x128xf32>, vector<1x128xf32> -> vector<1x128xf32>
      %71 = vector.extract_strided_slice %46 {offsets = [0, 10], sizes = [1, 1], strides = [1, 1]} : vector<1x11xf32> to vector<1x1xf32>
      %72 = vector.broadcast %71 : vector<1x1xf32> to vector<1x128xf32>
      %73 = arith.addf %70, %72 : vector<1x128xf32>
      %c0_35 = arith.constant 0 : index
      %c0_36 = arith.constant 0 : index
      %74 = vector.load %arg10[%c0_35, %c0_36] : memref<1x128xf32, #tpu.memory_space<vmem>>, vector<1x128xf32>
      tpu.vector_store %arg10[%c0_35, %c0_36], %73 {strides = array<i32>} : memref<1x128xf32, #tpu.memory_space<vmem>>, vector<1x128xf32>,
    } else {
    }
    return
  }
  func.func @transform_0(%arg0: i32) -> (i32, i32) {
    %c0_i32 = arith.constant 0 : i32
    %c0_i32_0 = arith.constant 0 : i32
    return %c0_i32, %arg0 : i32, i32
  }
  func.func @transform_1(%arg0: i32) -> (i32, i32) {
    %c0_i32 = arith.constant 0 : i32
    %c0_i32_0 = arith.constant 0 : i32
    return %c0_i32, %arg0 : i32, i32
  }
  func.func @transform_2(%arg0: i32) -> (i32, i32) {
    %c0_i32 = arith.constant 0 : i32
    %c0_i32_0 = arith.constant 0 : i32
    %c0_i32_1 = arith.constant 0 : i32
    return %c0_i32, %c0_i32_0 : i32, i32
  }
  func.func @transform_3(%arg0: i32) -> (i32, i32) {
    %c0_i32 = arith.constant 0 : i32
    %c0_i32_0 = arith.constant 0 : i32
    %c0_i32_1 = arith.constant 0 : i32
    return %c0_i32, %c0_i32_0 : i32, i32
  }
  func.func @transform_4(%arg0: i32) -> (i32, i32) {
    %c0_i32 = arith.constant 0 : i32
    %c0_i32_0 = arith.constant 0 : i32
    %c0_i32_1 = arith.constant 0 : i32
    return %c0_i32, %c0_i32_0 : i32, i32
  }
  func.func @transform_5(%arg0: i32) -> (i32, i32) {
    %c0_i32 = arith.constant 0 : i32
    %c0_i32_0 = arith.constant 0 : i32
    %c0_i32_1 = arith.constant 0 : i32
    return %c0_i32, %c0_i32_0 : i32, i32
  }
  func.func @transform_6(%arg0: i32) -> (i32, i32) {
    %c0_i32 = arith.constant 0 : i32
    %c0_i32_0 = arith.constant 0 : i32
    %c0_i32_1 = arith.constant 0 : i32
    return %c0_i32, %c0_i32_0 : i32, i32
  }
  func.func @transform_7(%arg0: i32) -> (i32, i32) {
    %c0_i32 = arith.constant 0 : i32
    %c0_i32_0 = arith.constant 0 : i32
    %c0_i32_1 = arith.constant 0 : i32
    return %c0_i32, %c0_i32_0 : i32, i32
  }
  func.func @transform_8(%arg0: i32) -> (i32, i32) {
    %c0_i32 = arith.constant 0 : i32
    %c0_i32_0 = arith.constant 0 : i32
    %c0_i32_1 = arith.constant 0 : i32
    return %c0_i32, %c0_i32_0 : i32, i32
  }
  func.func @transform_9(%arg0: i32) -> (i32, i32) {
    %c0_i32 = arith.constant 0 : i32
    %c0_i32_0 = arith.constant 0 : i32
    %c0_i32_1 = arith.constant 0 : i32
    return %c0_i32, %c0_i32_0 : i32, i32
  }
}

</mosaic_0001>

<bundles_post_ra>
// kernel: tpu_custom_call.1
= control target key start
LH: loop header
LB: loop body
LE: loop exit
PB: predicated region body
PF: predicated region fallthrough
CT: control target
= control target key end

     0   :  { %14 = vsyncpa [#allocation4], 0  ;;  %s1288_s0 = inlined_call_operand.hbm [shape: f32[3,128], index: 0, kind: input, shape index: {}]   ;;  %s1289_s1 = inlined_call_operand.vmem [shape: s32[1,128], index: 1, kind: input, shape index: {}]   ;;  %s1290_s2 = inlined_call_operand.vmem [shape: f32[1,128], index: 2, kind: input, shape index: {}]   ;;  %s1291_s3 = inlined_call_operand.vmem [shape: f32[1,128], index: 3, kind: input, shape index: {}]   ;;  %s1292_s4 = inlined_call_operand.vmem [shape: f32[10,4], index: 4, kind: input, shape index: {}]   ;;  %s1293_s5 = inlined_call_operand.vmem [shape: f32[10,12], index: 5, kind: input, shape index: {}]   ;;  %s1294_s6 = inlined_call_operand.vmem [shape: f32[10,11], index: 6, kind: input, shape index: {}]   ;;  %s1295_s7 = inlined_call_operand.hbm [shape: f32[10,13], index: 7, kind: input, shape index: {}]   ;;  %s1296_s8 = inlined_call_operand.vmem [shape: f32[1,11], index: 8, kind: input, shape index: {}]   ;;  %s1297_s9 = inlined_call_operand.hbm [shape: f32[1,128], index: 9, kind: output, shape index: {}]  }
   0x1   :  { %15 = vsyncpa [#allocation7], 0 }
   0x2   :  { %16 = vsyncpa [#allocation5], 0  ;;  %s1087_s30 = smov [#allocation3]   ;;  %s1088_s11 = smov [#allocation6]  }
   0x3   :  { %s23_s10 = sshll.u32 %s1087_s30, 4  ;;  %s44_s12 = sshll.u32 %s1088_s11, 4  ;;  %s24_s10 = int_to_ptr.vmem [resolvable:$true] %s23_s10  ;;  %s1155_s12 = int_to_ptr.vmem [resolvable:$true] %s44_s12 }
   0x4   :  { %s1015_s15 = scalar_lea.hbm %s1288_s0, 64 }
   0x5   :  { %p1016_p0 = scmp.ne.s32.totalorder %s1288_s0, %s1015_s15  ;;  %p1019_p1 = scmp.lt.u32.totalorder %s1015_s15, %s1288_s0 }
   0x7   :  { %p1021_p2 = pnand %p1019_p1, %p1016_p0 }
   0x9   :  { %1024 = shalt.err (!%p1021_p2)
}
   0xa   :  { %s1025_s20 = scalar_lea.vmem %s24_s10, 64  ;;  %p1030_p4 = scmp.lt.s32.totalorder %s24_s10, %s24_s10 }
   0xb   :  { %p1026_p3 = scmp.ne.s32.totalorder %s24_s10, %s1025_s20  ;;  %p1031_p5 = scmp.lt.s32.totalorder %s1025_s20, %s1025_s20 }
   0xd   :  { %p1032_p6 = por %p1031_p5, %p1030_p4 }
   0xf   :  { %p1033_p7 = pnand %p1032_p6, %p1026_p3 }
  0x11   :  { %1036 = shalt.err (!%p1033_p7)
}
  0x12   :  { %26 = dma.hbm_to_vmem [thread:$0]  %s1288_s0, 64, %s24_s10, [#allocation4]  }
  0x13   :  { %s1037_s25 = scalar_lea.hbm %s1295_s7, 256 }
  0x14   :  { %p1038_p8 = scmp.ne.s32.totalorder %s1295_s7, %s1037_s25  ;;  %p1041_p9 = scmp.lt.u32.totalorder %s1037_s25, %s1295_s7 }
  0x16   :  { %p1043_p10 = pnand %p1041_p9, %p1038_p8 }
  0x18   :  { %1046 = shalt.err (!%p1043_p10)
}
  0x19   :  { %s1047_s30 = scalar_lea.vmem %s1155_s12, 256  ;;  %p1052_p12 = scmp.lt.s32.totalorder %s1155_s12, %s1155_s12 }
  0x1a   :  { %p1048_p11 = scmp.ne.s32.totalorder %s1155_s12, %s1047_s30  ;;  %p1053_p13 = scmp.lt.s32.totalorder %s1047_s30, %s1047_s30 }
  0x1c   :  { %p1054_p0 = por %p1053_p13, %p1052_p12 }
  0x1e   :  { %p1055_p1 = pnand %p1054_p0, %p1048_p11 }
  0x20   :  { %1058 = shalt.err (!%p1055_p1)
}
  0x21   :  { %s1089_s0 = smov 128   ;;  %s1090_s10 = smov 8  }
  0x22   :  { %50 = dma.hbm_to_vmem [thread:$0]  %s1295_s7, 256, %s1155_s12, [#allocation7], %s1089_s0, %s1089_s0, %s1090_s10  }
  0x23   :  { %1081 = dma.done.wait [#allocation4], 64  }
  0x24   :  { %1082 = vsyncadd [#allocation4], 4294967232 }
  0x25   :  { %1083 = dma.done.wait [#allocation7], 256  }
  0x26   :  { %1084 = vsyncadd [#allocation7], 4294967040  ;;  %v1091_v0 = vmov 3   ;;  %vm87_vm0 = vcmask 1042432   ;;  %vm82_vm1 = vcmask 23552   ;;  %v66_v2 = vld [vmem:[%s1292_s4] sm:$0xff]  ;;  %v178_v20 = vlaneseq }
  0x27   :  { %1001 = vset.pattern.permute.xlu0 %v1091_v0  ;;  %v1186_v1 = vld [vmem:[#allocation3] sm:$0x7]  ;;  %v67_v3 = vld [vmem:[%s1292_s4 + $0x8] sm:$0x3]  ;;  %863 = vmatprep.mubr.msk.f32.mxu0 %vm82_vm1, %v66_v2  ;;  %v68_v4 = vld [vmem:[%s1293_s5] sm:$0xff]  ;;  %s1092_s18 = smov 127  }
  0x28   :  { %861 = vmatprep.subr.msk.mxu0 %vm87_vm0, %v1186_v1  ;;  %74 = vperm.xlu0 %1001, %v66_v2   ;;  %v69_v5 = vld [vmem:[%s1293_s5 + $0x8] sm:$0x3]  ;;  %v1093_v6 = vmov 0   ;;  %v1094_v7 = vmov 11   ;;  %vm188_vm2 = vcmask 80896   ;;  %vm193_vm3 = vcmask 1041408  }
  0x29   :  { %862 = vmatpush3.msk.msra.mxu0 %vm87_vm0, %v1186_v1  ;;  %184 = vrot.lane.b32.xlu1 %v68_v4, %s1092_s18  ;;  %vm1095_vm4 = vmmov 1   ;;  %v70_v21 = vld [vmem:[%s1294_s6] sm:$0xff]  ;;  %v1215_v22 = vshrl.u32 %v178_v20, 7  ;;  %v1096_v25 = vmov 10   ;;  %v1097_v28 = vmov 1.0|1.0  }
  0x2a   :  { %864 = vmatmul.mubr.msk.f32.vlgmr.msra.gmra.mrb[0].mxu0 %vm82_vm1, %v67_v3  ;;  %1003 = vset.pattern.permute.xlu1 %v1093_v6  ;;  %vm1203_vm5 = vmpackc.low %vm193_vm3, %vm1095_vm4  ;;  %v785_v24 = vld [vmem:[%s1289_s1] ss:$0 sm:$0xff]  ;;  %v1231_v31 = vld [vmem:[%s1294_s6 + $0x8] sm:$0x3]  ;;  %v1098_v61 = vmov 0.0   ;;  %v1099_v62 = vmov 1  }
  0x2b   :  { %v380_v23 = vadd.s32 8, %v1215_v22  ;;  %vm400_vm6 = vcmp.eq.s32.totalorder %v1215_v22, %v785_v24  ;;  %v381_v26 = vadd.s32 16, %v1215_v22  ;;  %v382_v27 = vadd.s32 24, %v1215_v22  ;;  %v532_v59 = vld [vmem:[#allocation6] sm:$0xff]  ;;  %v533_v60 = vld [vmem:[#allocation6 + $0x8] sm:$0x3] }
  0x2c   :  { %79 = vperm.xlu0 %1001, %v67_v3   ;;  %v383_v29 = vadd.s32 32, %v1215_v22  ;;  %v384_v30 = vadd.s32 40, %v1215_v22  ;;  %v385_v32 = vadd.s32 48, %v1215_v22  ;;  %v386_v33 = vadd.s32 56, %v1215_v22  ;;  %64 = vst [vmem:[#allocation2 + $0x8] sm:$0x3] %v1098_v61 }
  0x2d   :  { %186 = vrot.lane.b32.xlu1 %v69_v5, %s1092_s18  ;;  %vm401_vm7 = vcmp.eq.s32.totalorder %v380_v23, %v785_v24  ;;  %vm402_vm9 = vcmp.eq.s32.totalorder %v381_v26, %v785_v24  ;;  %vm403_vm10 = vcmp.eq.s32.totalorder %v382_v27, %v785_v24  ;;  %v387_v34 = vadd.s32 64, %v1215_v22  ;;  %s1100_s6 = smov 126  }
  0x2e   :  { %vm941_vm8 = vmpackc.low %vm401_vm7, %vm400_vm6  ;;  %vm404_vm12 = vcmp.eq.s32.totalorder %v383_v29, %v785_v24  ;;  %vm405_vm13 = vcmp.eq.s32.totalorder %v384_v30, %v785_v24  ;;  %vm406_vm15 = vcmp.eq.s32.totalorder %v385_v32, %v785_v24  ;;  %vm407_vm0 = vcmp.eq.s32.totalorder %v386_v33, %v785_v24  ;;  %v534_v33 = vld [vmem:[%s1296_s8] sm:$0x1]  ;;  %s1104_s8 = smov [#allocation8]  }
  0x2f   :  { %942 = vmatprep.subr.msk.bf16.mxu1 %vm941_vm8, %v1097_v28  ;;  %vm945_vm11 = vmpackc.low %vm403_vm10, %vm402_vm9  ;;  %v388_v35 = vadd.s32 72, %v1215_v22  ;;  %vm408_vm3 = vcmp.eq.s32.totalorder %v387_v34, %v785_v24  ;;  %v389_v36 = vadd.s32 80, %v1215_v22  ;;  %v390_v37 = vadd.s32 88, %v1215_v22  ;;  %s766_s28 = sshll.u32 %s1104_s8, 4  ;;  %s767_s28 = int_to_ptr.vmem [resolvable:$true] %s766_s28 }
  0x30   :  { %1002 = vset.pattern.permute.xlu0 %v1093_v6  ;;  %944 = vmatpush3.bf16.xpose.msk.msra.mxu1 %vm941_vm8, %v1097_v28  ;;  %vm949_vm14 = vmpackc.low %vm405_vm13, %vm404_vm12  ;;  %v391_v38 = vadd.s32 96, %v1215_v22  ;;  %v392_v39 = vadd.s32 104, %v1215_v22  ;;  %v393_v40 = vadd.s32 112, %v1215_v22  ;;  %v394_v41 = vadd.s32 120, %v1215_v22  ;;  %s1059_s29 = scalar_lea.vmem %s767_s28, 16  ;;  %s1063_s30 = scalar_lea.vmem %s767_s28, 32 }
  0x31   :  { %170 = vperm.xlu0 %1002, %v68_v4   ;;  %175 = vperm.xlu1 %1003, %v69_v5   ;;  %vm953_vm1 = vmpackc.low %vm407_vm0, %vm406_vm15  ;;  %vm409_vm4 = vcmp.eq.s32.totalorder %v388_v35, %v785_v24  ;;  %vm410_vm7 = vcmp.eq.s32.totalorder %v389_v36, %v785_v24  ;;  %vm411_vm8 = vcmp.eq.s32.totalorder %v390_v37, %v785_v24  ;;  %v180_v42 = vsub.s32 0, %v1215_v22  ;;  %p1060_p2 = scmp.ne.s32.totalorder %s767_s28, %s1059_s29  ;;  %p1064_p3 = scmp.lt.s32.totalorder %s767_s28, %s767_s28 }
  0x32   :  { %946 = vmatprep.subr.msk.bf16.mxu1 %vm945_vm11, %v1097_v28  ;;  %vm957_vm6 = vmpackc.low %vm409_vm4, %vm408_vm3  ;;  %vm412_vm10 = vcmp.eq.s32.totalorder %v391_v38, %v785_v24  ;;  %vm414_vm13 = vcmp.eq.s32.totalorder %v393_v40, %v785_v24  ;;  %v1102_v32 = vmov 0.0|0.0   ;;  %vm1103_vm0 = vmmov 0   ;;  %p1065_p4 = scmp.lt.s32.totalorder %s1063_s30, %s1059_s29 }
  0x33   :  { %vm961_vm9 = vmpackc.low %vm411_vm8, %vm410_vm7  ;;  %v181_v43 = vrot.slane %v1186_v1, %v180_v42 }
  0x34   :  { %p1066_p5 = por %p1065_p4, %p1064_p3 }
  0x35   :  { %1005 = vset.pattern.permute.xlu0 %v1094_v7  ;;  %1004 = vset.pattern.permute.xlu1 %v1094_v7 }
  0x36   :  { %279 = vperm.xlu0 %1005, %v69_v5   ;;  %275 = vperm.xlu1 %1004, %v68_v4   ;;  %p1067_p6 = pnand %p1066_p5, %p1060_p2 }
  0x38   :  { %948 = vmatpush3.bf16.xpose.msk.msra.mxu1 %vm945_vm11, %v1097_v28  ;;  %vm413_vm11 = vcmp.eq.s32.totalorder %v392_v39, %v785_v24 }
  0x39   :  { %950 = vmatprep.subr.msk.bf16.mxu1 %vm949_vm14, %v1097_v28  ;;  %vm965_vm12 = vmpackc.low %vm413_vm11, %vm412_vm10 }
  0x3a   :  { %1007 = vset.pattern.permute.xlu0 %v1093_v6  ;;  %1006 = vset.pattern.permute.xlu1 %v1096_v25 }
  0x3b   :  { %288 = vperm.xlu1 %1006, %v70_v21   ;;  %549 = vperm.xlu0 %1007, %v532_v59  }
  0x3f   :  { %293 = vperm.xlu1 %1006, %v1231_v31   ;;  %1010 = vset.pattern.permute.xlu0 %v1099_v62 }
  0x40   :  { %952 = vmatpush3.bf16.xpose.msk.msra.mxu1 %vm949_vm14, %v1097_v28  ;;  %vm415_vm14 = vcmp.eq.s32.totalorder %v394_v41, %v785_v24  ;;  %572 = vperm.xlu0 %1010, %v533_v60  }
  0x41   :  { %954 = vmatprep.subr.msk.bf16.mxu1 %vm953_vm1, %v1097_v28  ;;  %vm969_vm15 = vmpackc.low %vm415_vm14, %vm414_vm13 }
  0x43   :  { %1008 = vset.pattern.permute.xlu1 %v1093_v6 }
  0x44   :  { %554 = vperm.xlu1 %1008, %v533_v60  }
  0x48   :  { %956 = vmatpush3.bf16.xpose.msk.msra.mxu1 %vm953_vm1, %v1097_v28  ;;  %1009 = vset.pattern.permute.xlu1 %v1099_v62 }
  0x49   :  { %958 = vmatprep.subr.msk.bf16.mxu1 %vm957_vm6, %v1097_v28  ;;  %568 = vperm.xlu1 %1009, %v532_v59  }
  0x4d   :  { %587 = vrot.lane.b32.xlu1 %v532_v59, %s1100_s6 }
  0x50   :  { %960 = vmatpush3.bf16.xpose.msk.msra.mxu1 %vm957_vm6, %v1097_v28 }
  0x51   :  { %962 = vmatprep.subr.msk.bf16.mxu1 %vm961_vm9, %v1097_v28  ;;  %589 = vrot.lane.b32.xlu1 %v533_v60, %s1100_s6 }
  0x58   :  { %964 = vmatpush3.bf16.xpose.msk.msra.mxu1 %vm961_vm9, %v1097_v28 }
  0x59   :  { %966 = vmatprep.subr.msk.bf16.mxu1 %vm965_vm12, %v1097_v28 }
  0x60   :  { %968 = vmatpush3.bf16.xpose.msk.msra.mxu1 %vm965_vm12, %v1097_v28 }
  0x61   :  { %970 = vmatprep.subr.msk.bf16.mxu1 %vm969_vm15, %v1097_v28 }
  0x68   :  { %972 = vmatpush3.bf16.xpose.msk.msra.mxu1 %vm969_vm15, %v1097_v28 }
  0x9b   :  { %v185_v8 = vpop.permute.xlu1 %184 }
  0x9c   :  { %870 = vmatprep.mubr.msk.f32.mxu0 %vm188_vm2, %v185_v8  ;;  %v1101_v8 = vmov 12  }
  0x9d   :  { %1012 = vset.pattern.permute.xlu1 %v1101_v8  ;;  %1011 = vset.pattern.permute.xlu0 %v1101_v8 }
  0x9e   :  { %584 = vperm.xlu1 %1012, %v533_v60   ;;  %580 = vperm.xlu0 %1011, %v532_v59  }
  0x9f   :  { %v187_v19 = vpop.permute.xlu1 %186 }
  0xa2   :  { %1013 = vset.pattern.permute.xlu1 %v1096_v25  ;;  %1014 = vset.pattern.permute.xlu0 %v1096_v25 }
  0xa3   :  { %677 = vperm.xlu1 %1013, %v534_v33  }
  0xa7   :  { %v75_v9 = vpop.permute.xlu0 %74 }
  0xab   :  { %v80_v10 = vpop.permute.xlu0 %79 }
  0xb0   :  { %v176_v44 = vpop.permute.xlu1 %175  ;;  %v171_v45 = vpop.permute.xlu0 %170 }
  0xb1   :  { %v183_v46 = vmul.f32 %v181_v43, %v176_v44  ;;  %v182_v47 = vmul.f32 %v181_v43, %v171_v45 }
  0xb5   :  { %v280_v49 = vpop.permute.xlu0 %279  ;;  %v276_v52 = vpop.permute.xlu1 %275 }
  0xba   :  { %v289_v63 = vpop.permute.xlu1 %288 }
  0xbe   :  { %v294_v2 = vpop.permute.xlu1 %293 }
  0xc3   :  { %v555_v5 = vpop.permute.xlu1 %554 }
  0xc8   :  { %v569_v6 = vpop.permute.xlu1 %568 }
  0xcc   :  { %v588_v7 = vpop.permute.xlu1 %587 }
  0xfd   :  { %v865_v11 = vpop.f32.mrb[0].mxu0 }
  0xfe   :  { %v163_v12 = vadd.f32 %v865_v11, %v80_v10  ;;  %v157_v13 = vpop.f32.mrb[1].mxu0 }
  0xff   :  { %v158_v14 = vadd.f32 %v157_v13, %v75_v9  ;;  %v449_v9 = vld [vmem:[#allocation2 + $0x8] sm:$0x3]  ;;  %v819_v13 = vld [vmem:[%s1290_s2] ss:$0 sm:$0xff] }
 0x100   :  { %v167_v15 = vmax.f32 %v163_v12, 0.0 }
 0x101   :  { %v166_v16 = vmax.f32 %v158_v14, 0.0  ;;  %v550_v14 = vpop.permute.xlu0 %549 }
 0x103   :  { %v929_v18 = vpack.c.bf16 %v167_v15, %v166_v16  ;;  %v818_v15 = vld [vmem:[%s1291_s3] ss:$0 sm:$0xff]  ;;  %v563_v16 = vmul.f32 %v819_v13, %v550_v14 }
 0x105   :  { %931 = vmatprep.subr.msk.bf16.mxu0 %vm1203_vm5, %v929_v18  ;;  %v573_v24 = vpop.permute.xlu0 %572 }
 0x106   :  { %934 = vmatpush3.bf16.msk.msra.mxu0 %vm1203_vm5, %v929_v18 }
 0x109   :  { %871 = vmatmul.mubr.msk.f32.vlgmr.msra.gmra.mrb[2].mxu0 %vm188_vm2, %v187_v19  ;;  %v564_v19 = vmul.f32 %v819_v13, %v555_v5 }
 0x10a   :  { %877 = vmatprep.mubr.msk.f32.mxu0 %vm188_vm2, %v70_v21 }
 0x11d   :  { %v581_v35 = vpop.permute.xlu0 %580 }
 0x1dc   :  { %v872_v48 = vpop.f32.mrb[2].mxu0 }
 0x1dd   :  { %v273_v50 = vadd.f32 %v872_v48, %v183_v46  ;;  %v263_v51 = vpop.f32.mrb[3].mxu0 }
 0x1de   :  { %v272_v53 = vadd.f32 %v263_v51, %v182_v47 }
 0x1df   :  { %v283_v54 = vadd.f32 %v280_v49, %v273_v50 }
 0x1e0   :  { %v282_v55 = vadd.f32 %v276_v52, %v272_v53 }
 0x1e1   :  { %v285_v56 = vmax.f32 %v283_v54, 0.0 }
 0x1e2   :  { %v284_v57 = vmax.f32 %v282_v55, 0.0 }
 0x1e4   :  { %v935_v58 = vpack.c.bf16 %v285_v56, %v284_v57 }
 0x1e6   :  { %937 = vmatprep.subr.msk.bf16.mxu0 %vm1203_vm5, %v935_v58 }
 0x1e7   :  { %940 = vmatpush3.bf16.msk.msra.mxu0 %vm1203_vm5, %v935_v58 }
 0x1ea   :  { %878 = vmatmul.mubr.msk.f32.vlgmr.msra.gmra.mrb[4].mxu0 %vm188_vm2, %v1231_v31  ;;  %v590_v31 = vpop.permute.xlu1 %589 }
 0x1eb   :  { %919 = vmatprep.mubr.msk.f32.mxu0 %vm188_vm2, %v588_v7 }
 0x1ee   :  { %v585_v34 = vpop.permute.xlu1 %584 }
 0x1f2   :  { %v678_v44 = vpop.permute.xlu1 %677 }
 0x1f3   :  { %v683_v45 = vrot.slane %v678_v44, %v180_v42 }
 0x2bd   :  { %v879_v0 = vpop.f32.mrb[4].mxu0 }
 0x2be   :  { %v369_v1 = vpop.f32.mrb[5].mxu0  ;;  %v375_v4 = vadd.f32 %v879_v0, %v294_v2 }
 0x2bf   :  { %v370_v3 = vadd.f32 %v369_v1, %v289_v63 }
 0x2c1   :  { %912 = vmatprep.mubr.f32.mxu1 %v370_v3 }
 0x2c2   :  { %913 = vmatmul.mubr.f32.vlgmr.msra.gmra.mrb[0].mxu1 %v375_v4 }
 0x395   :  { %v914_v10 = vpop.f32.mrb[0].mxu1 }
 0x396   :  { %v526_v11 = vadd.f32 %v914_v10, %v449_v9  ;;  %v516_v12 = vpop.f32.mrb[1].mxu1 }
 0x397   :  { %v545_v18 = vmul.f32 %v818_v15, %v516_v12 }
 0x398   :  { %528 = vst [vmem:[#allocation2 + $0x8] sm:$0x3] %v526_v11 }
 0x399   :  { %v565_v20 = vadd.f32 %v563_v16, %v545_v18 }
 0x39b   :  { %v575_v26 = vadd.f32 %v569_v6, %v565_v20 }
 0x39d   :  { %v577_v29 = vmax.f32 %v575_v26, 0.0 }
 0x39f   :  { %v537_v21 = vld [vmem:[#allocation2 + $0x8] sm:$0x3] }
 0x3a0   :  { %v546_v23 = vmul.f32 %v818_v15, %v537_v21 }
 0x3a2   :  { %v566_v25 = vadd.f32 %v564_v19, %v546_v23 }
 0x3a4   :  { %v576_v27 = vadd.f32 %v573_v24, %v566_v25 }
 0x3a6   :  { %v578_v28 = vmax.f32 %v576_v27, 0.0 }
 0x3a8   :  { %v973_v30 = vpack.c.bf16 %v578_v28, %v577_v29 }
 0x3aa   :  { %975 = vmatprep.subr.msk.bf16.mxu0 %vm1203_vm5, %v973_v30 }
 0x3ab   :  { %978 = vmatpush3.bf16.msk.msra.mxu0 %vm1203_vm5, %v973_v30 }
 0x3ac   :  { %979 = vmatprep.subr.bf16.mxu0 %v1102_v32 }
 0x3ae   :  { %920 = vmatmul.mubr.msk.f32.vlgmr.msra.gmra.mrb[6].mxu0 %vm188_vm2, %v590_v31 }
 0x3af   :  { %926 = vmatprep.mubr.msk.f32.mxu0 %vm1103_vm0, %v1098_v61 }
 0x481   :  { %v921_v36 = vpop.f32.mrb[6].mxu0 }
 0x482   :  { %v670_v37 = vadd.f32 %v921_v36, %v585_v34  ;;  %v664_v38 = vpop.f32.mrb[7].mxu0 }
 0x483   :  { %v665_v39 = vadd.f32 %v664_v38, %v581_v35 }
 0x484   :  { %v674_v40 = vmax.f32 %v670_v37, 0.0 }
 0x485   :  { %v673_v41 = vmax.f32 %v665_v39, 0.0 }
 0x487   :  { %v980_v43 = vpack.c.bf16 %v674_v40, %v673_v41 }
 0x489   :  { %982 = vmatpush3.bf16.msk.msra.mxu0 %vm1203_vm5, %v980_v43 }
 0x48c   :  { %927 = vmatmul.mubr.msk.f32.vlgmr.msra.gmra.mrb[8].mxu0 %vm188_vm2, %v534_v33 }
 0x55f   :  { %v755_v46 = vpop.f32.mrb[8].mxu0 }
 0x560   :  { %v756_v47 = vadd.f32 %v755_v46, %v683_v45  ;;  %v928_v48 = vpop.f32.mrb[9].mxu0 }
 0x562   :  { %759 = vst [vmem:[#allocation8] sm:$0x1] %v756_v47 }
 0x563   :  { %1070 = shalt.err (!%p1067_p6)
}
 0x564   :  { %s1071_s11 = scalar_lea.hbm %s1297_s9, 16 }
 0x565   :  { %p1072_p7 = scmp.ne.s32.totalorder %s1297_s9, %s1071_s11  ;;  %p1075_p8 = scmp.lt.u32.totalorder %s1071_s11, %s1297_s9 }
 0x567   :  { %p1077_p9 = pnand %p1075_p8, %p1072_p7 }
 0x569   :  { %1080 = shalt.err (!%p1077_p9)
}
 0x56a   :  { %769 = dma.vmem_to_hbm [thread:$0]  %s767_s28, 16, %s1297_s9, [#allocation5]  }
 0x56b   :  { %1085 = dma.done.wait [#allocation5], 16  }
 0x56c   :  { %1086 = vsyncadd [#allocation5], 4294967280 }
 0x56d   :  { %773 = vsyncpa [#allocation4], 1 }
 0x56e   :  { %774 = vsyncpa [#allocation7], 1 }
 0x56f   :  { %775 = vsyncpa [#allocation5], 1 }

</bundles_post_ra>
